<compile_context>
chip_gen: v7x
topology: tpu7x:2x2x1
jax: 0.10.0
libtpu: 0.0.40
codegen_flags: <defaults>
</compile_context>

<pallas_src>
import jax
import jax.numpy as jnp
from jax.experimental import pallas as pl
from jax.experimental.pallas import tpu as pltpu

HIDDEN = 256


def _critic_kernel(s_ref, a_ref, w1_ref, b1_ref, w2_ref, b2_ref,
                   w3t_ref, b3_ref, o_ref):
    """Both twin Q-networks, statically unrolled, one invocation (grid=()).

    s_ref  : (B, S)       f32   VMEM
    a_ref  : (B, A)       f32   VMEM
    w1_ref : (2, S+A, H)  bf16  VMEM   rows [0,S) = state part, [S,S+A) = action part
    b1_ref : (2, 1, H)    f32   VMEM
    w2_ref : (2, H, H)    bf16  VMEM
    b2_ref : (2, 1, H)    f32   VMEM
    w3t_ref: (2, 1, H)    bf16  VMEM   (final layer stored transposed, lane-dense)
    b3_ref : (2,)         f32   SMEM
    o_ref  : (2, B)       f32   VMEM   (lane-dense output, B on the lane axis)
    """
    s = s_ref[...]                      # (B, S) f32
    a = a_ref[...]                      # (B, A) f32
    S = s.shape[1]
    A = a.shape[1]

    for net in range(2):                # static unroll of the twin nets
        # ---- Layer 1: K = S+A is tiny -> VPU broadcast multiply-adds. ----
        w1 = w1_ref[net].astype(jnp.float32)            # (S+A, H)
        acc = s[:, 0:1] * w1[0:1, :]                    # (B, H) f32
        for k in range(1, S):
            acc = acc + s[:, k:k + 1] * w1[k:k + 1, :]
        for k in range(A):
            acc = acc + a[:, k:k + 1] * w1[S + k:S + k + 1, :]
        h1 = jnp.maximum(acc + b1_ref[net], 0.0)        # (B, H) f32

        # ---- Layer 2: the one real MXU matmul (f32 activations). ----
        h2 = jnp.dot(h1, w2_ref[net].astype(jnp.float32),
                     preferred_element_type=jnp.float32) + b2_ref[net]
        h2 = jnp.maximum(h2, 0.0)                       # (B, H) f32

        # ---- Layer 3: N = 1 projection as VPU mul + XLU lane reduce. ----
        w3t = w3t_ref[net].astype(jnp.float32)          # (1, H)
        q = jnp.sum(h2 * w3t, axis=-1) + b3_ref[net]    # (B,)
        o_ref[net, :] = q


def critic_forward(state, action, params):
    """Fused twin-Q forward. Returns (q1, q2), each (B, 1) like the PyTorch module."""
    w1, b1, w2, b2, w3t, b3 = params
    B, S = state.shape
    A = action.shape[1]
    H = w2.shape[-1]

    # Advisory cost hint: 2 nets, per net (S+A)*H + H*H + H MACs on a batch of B.
    flops = 2 * 2 * B * ((S + A) * H + H * H + H)
    bytes_accessed = (
        (w1.size + w2.size + w3t.size) * 2        # bf16 weights
        + (b1.size + b2.size + b3.size) * 4       # f32 biases
        + (state.size + action.size) * 4          # shared inputs, DMA'd once
        + 2 * B * 4                               # outputs
    )
    cost = pl.CostEstimate(flops=flops, transcendentals=0,
                           bytes_accessed=bytes_accessed)

    vmem = pl.BlockSpec(memory_space=pltpu.MemorySpace.VMEM)
    smem = pl.BlockSpec(memory_space=pltpu.MemorySpace.SMEM)

    out = pl.pallas_call(
        _critic_kernel,
        out_shape=jax.ShapeDtypeStruct((2, B), jnp.float32),
        in_specs=[vmem, vmem, vmem, vmem, vmem, vmem, vmem, smem],
        out_specs=vmem,
        cost_estimate=cost,
    )(state, action, w1, b1, w2, b2, w3t, b3)
    return out[0, :, None], out[1, :, None]


def _orthogonal(key, shape, gain=1.0):
    """Deterministic orthogonal init (matches nn.init.orthogonal_ semantics)."""
    rows, cols = shape
    n = max(rows, cols)
    a = jax.random.normal(key, (n, n), dtype=jnp.float32)
    q, r = jnp.linalg.qr(a)
    d = jnp.diagonal(r)
    q = q * jnp.where(d >= 0, 1.0, -1.0)  # safe sign (no zeroed columns)
    return gain * q[:rows, :cols]


def init_critic_params(key, state_dim, action_dim, hidden_dim=HIDDEN):
    """Both twin Q-nets; every parameter stacked along a leading axis of 2.

    Weights are stored (in, out) and cast to bf16; biases stay f32.
    The final layer w3 is stored transposed (1, H) so the kernel can use a
    lane-dense VPU multiply + lane reduction instead of an N=1 MXU matmul.
    """
    keys = jax.random.split(key, 6)
    w1, b1, w2, b2, w3t, b3 = [], [], [], [], [], []
    for net in range(2):
        k1, k2, k3 = keys[3 * net], keys[3 * net + 1], keys[3 * net + 2]
        w1.append(_orthogonal(k1, (state_dim + action_dim, hidden_dim)))
        b1.append(jnp.zeros((1, hidden_dim), jnp.float32))
        w2.append(_orthogonal(k2, (hidden_dim, hidden_dim)))
        b2.append(jnp.zeros((1, hidden_dim), jnp.float32))
        w3t.append(_orthogonal(k3, (hidden_dim, 1)).T)   # stored (1, H)
        b3.append(jnp.zeros((), jnp.float32))
    stack_bf16 = lambda xs: jnp.stack(xs).astype(jnp.bfloat16)
    stack_f32 = lambda xs: jnp.stack(xs).astype(jnp.float32)
    return (stack_bf16(w1), stack_f32(b1),
            stack_bf16(w2), stack_f32(b2),
            stack_bf16(w3t), stack_f32(b3))


if __name__ == "__main__":
    key = jax.random.PRNGKey(0)
    k_state, k_action, k_params = jax.random.split(key, 3)

    # Small example shapes; SAC training should use B >= 128 per call so the
    # MXU M dimension is actually filled.
    batch = 8
    state_dim = 6   # ball-plate system state
    action_dim = 2  # plate tilt actions

    state = jax.random.normal(k_state, (batch, state_dim), dtype=jnp.float32)
    action = jax.random.normal(k_action, (batch, action_dim), dtype=jnp.float32)

    params = init_critic_params(k_params, state_dim, action_dim)

    q1, q2 = jax.jit(critic_forward)(state, action, params)
    jax.block_until_ready((q1, q2))

    # Pure-JAX f32 reference of the same math (bf16 weights upcast).
    def ref_net(net):
        w1, b1, w2, b2, w3t, b3 = [p[net].astype(jnp.float32) for p in params]
        sa = jnp.concatenate([state, action], axis=-1)
        h1 = jnp.maximum(sa @ w1 + b1, 0.0)
        h2 = jnp.maximum(h1 @ w2 + b2, 0.0)
        return h2 @ w3t.T + b3

    assert q1.shape == (batch, 1) and q2.shape == (batch, 1)
    assert jnp.allclose(q1, ref_net(0), atol=1e-3, rtol=1e-3)
    assert jnp.allclose(q2, ref_net(1), atol=1e-3, rtol=1e-3)

    print("KERNEL_OK")
</pallas_src>

<mosaic_0001>
module attributes {stable_mosaic.version = 11 : i64} {
  func.func @_critic_kernel(%arg0: memref<8x6xf32, #tpu.memory_space<vmem>>, %arg1: memref<8x2xf32, #tpu.memory_space<vmem>>, %arg2: memref<2x8x256xbf16, #tpu.memory_space<vmem>>, %arg3: memref<2x1x256xf32, #tpu.memory_space<vmem>>, %arg4: memref<2x256x256xbf16, #tpu.memory_space<vmem>>, %arg5: memref<2x1x256xf32, #tpu.memory_space<vmem>>, %arg6: memref<2x1x256xbf16, #tpu.memory_space<vmem>>, %arg7: memref<2xf32, #tpu.memory_space<smem>>, %arg8: memref<2x8xf32, #tpu.memory_space<vmem>>) attributes {dimension_semantics = [], scalar_prefetch = 0 : i64, scratch_operands = 0 : i64, tpu.core_type = #tpu.core_type<tc>} {
    %c0 = arith.constant 0 : index
    %c0_0 = arith.constant 0 : index
    %0 = vector.load %arg0[%c0, %c0_0] : memref<8x6xf32, #tpu.memory_space<vmem>>, vector<8x6xf32>
    %c0_1 = arith.constant 0 : index
    %c0_2 = arith.constant 0 : index
    %1 = vector.load %arg1[%c0_1, %c0_2] : memref<8x2xf32, #tpu.memory_space<vmem>>, vector<8x2xf32>
    %c0_3 = arith.constant 0 : index
    %c0_4 = arith.constant 0 : index
    %c0_5 = arith.constant 0 : index
    %2 = vector.load %arg2[%c0_3, %c0_4, %c0_5] : memref<2x8x256xbf16, #tpu.memory_space<vmem>>, vector<1x8x256xbf16>
    %3 = vector.shape_cast %2 : vector<1x8x256xbf16> to vector<8x256xbf16>
    %4 = arith.extf %3 : vector<8x256xbf16> to vector<8x256xf32>
    %5 = vector.extract_strided_slice %0 {offsets = [0, 0], sizes = [8, 1], strides = [1, 1]} : vector<8x6xf32> to vector<8x1xf32>
    %6 = vector.extract_strided_slice %4 {offsets = [0, 0], sizes = [1, 256], strides = [1, 1]} : vector<8x256xf32> to vector<1x256xf32>
    %7 = vector.broadcast %5 : vector<8x1xf32> to vector<8x256xf32>
    %8 = vector.broadcast %6 : vector<1x256xf32> to vector<8x256xf32>
    %9 = arith.mulf %7, %8 : vector<8x256xf32>
    %10 = vector.extract_strided_slice %0 {offsets = [0, 1], sizes = [8, 1], strides = [1, 1]} : vector<8x6xf32> to vector<8x1xf32>
    %11 = vector.extract_strided_slice %4 {offsets = [1, 0], sizes = [1, 256], strides = [1, 1]} : vector<8x256xf32> to vector<1x256xf32>
    %12 = vector.broadcast %10 : vector<8x1xf32> to vector<8x256xf32>
    %13 = vector.broadcast %11 : vector<1x256xf32> to vector<8x256xf32>
    %14 = arith.mulf %12, %13 : vector<8x256xf32>
    %15 = arith.addf %9, %14 : vector<8x256xf32>
    %16 = vector.extract_strided_slice %0 {offsets = [0, 2], sizes = [8, 1], strides = [1, 1]} : vector<8x6xf32> to vector<8x1xf32>
    %17 = vector.extract_strided_slice %4 {offsets = [2, 0], sizes = [1, 256], strides = [1, 1]} : vector<8x256xf32> to vector<1x256xf32>
    %18 = vector.broadcast %16 : vector<8x1xf32> to vector<8x256xf32>
    %19 = vector.broadcast %17 : vector<1x256xf32> to vector<8x256xf32>
    %20 = arith.mulf %18, %19 : vector<8x256xf32>
    %21 = arith.addf %15, %20 : vector<8x256xf32>
    %22 = vector.extract_strided_slice %0 {offsets = [0, 3], sizes = [8, 1], strides = [1, 1]} : vector<8x6xf32> to vector<8x1xf32>
    %23 = vector.extract_strided_slice %4 {offsets = [3, 0], sizes = [1, 256], strides = [1, 1]} : vector<8x256xf32> to vector<1x256xf32>
    %24 = vector.broadcast %22 : vector<8x1xf32> to vector<8x256xf32>
    %25 = vector.broadcast %23 : vector<1x256xf32> to vector<8x256xf32>
    %26 = arith.mulf %24, %25 : vector<8x256xf32>
    %27 = arith.addf %21, %26 : vector<8x256xf32>
    %28 = vector.extract_strided_slice %0 {offsets = [0, 4], sizes = [8, 1], strides = [1, 1]} : vector<8x6xf32> to vector<8x1xf32>
    %29 = vector.extract_strided_slice %4 {offsets = [4, 0], sizes = [1, 256], strides = [1, 1]} : vector<8x256xf32> to vector<1x256xf32>
    %30 = vector.broadcast %28 : vector<8x1xf32> to vector<8x256xf32>
    %31 = vector.broadcast %29 : vector<1x256xf32> to vector<8x256xf32>
    %32 = arith.mulf %30, %31 : vector<8x256xf32>
    %33 = arith.addf %27, %32 : vector<8x256xf32>
    %34 = vector.extract_strided_slice %0 {offsets = [0, 5], sizes = [8, 1], strides = [1, 1]} : vector<8x6xf32> to vector<8x1xf32>
    %35 = vector.extract_strided_slice %4 {offsets = [5, 0], sizes = [1, 256], strides = [1, 1]} : vector<8x256xf32> to vector<1x256xf32>
    %36 = vector.broadcast %34 : vector<8x1xf32> to vector<8x256xf32>
    %37 = vector.broadcast %35 : vector<1x256xf32> to vector<8x256xf32>
    %38 = arith.mulf %36, %37 : vector<8x256xf32>
    %39 = arith.addf %33, %38 : vector<8x256xf32>
    %40 = vector.extract_strided_slice %1 {offsets = [0, 0], sizes = [8, 1], strides = [1, 1]} : vector<8x2xf32> to vector<8x1xf32>
    %41 = vector.extract_strided_slice %4 {offsets = [6, 0], sizes = [1, 256], strides = [1, 1]} : vector<8x256xf32> to vector<1x256xf32>
    %42 = vector.broadcast %40 : vector<8x1xf32> to vector<8x256xf32>
    %43 = vector.broadcast %41 : vector<1x256xf32> to vector<8x256xf32>
    %44 = arith.mulf %42, %43 : vector<8x256xf32>
    %45 = arith.addf %39, %44 : vector<8x256xf32>
    %46 = vector.extract_strided_slice %1 {offsets = [0, 1], sizes = [8, 1], strides = [1, 1]} : vector<8x2xf32> to vector<8x1xf32>
    %47 = vector.extract_strided_slice %4 {offsets = [7, 0], sizes = [1, 256], strides = [1, 1]} : vector<8x256xf32> to vector<1x256xf32>
    %48 = vector.broadcast %46 : vector<8x1xf32> to vector<8x256xf32>
    %49 = vector.broadcast %47 : vector<1x256xf32> to vector<8x256xf32>
    %50 = arith.mulf %48, %49 : vector<8x256xf32>
    %51 = arith.addf %45, %50 : vector<8x256xf32>
    %c0_6 = arith.constant 0 : index
    %c0_7 = arith.constant 0 : index
    %c0_8 = arith.constant 0 : index
    %52 = vector.load %arg3[%c0_6, %c0_7, %c0_8] : memref<2x1x256xf32, #tpu.memory_space<vmem>>, vector<1x1x256xf32>
    %53 = vector.shape_cast %52 : vector<1x1x256xf32> to vector<1x256xf32>
    %54 = vector.broadcast %53 : vector<1x256xf32> to vector<8x256xf32>
    %55 = arith.addf %51, %54 : vector<8x256xf32>
    %cst = arith.constant 0.000000e+00 : f32
    %56 = vector.broadcast %cst : f32 to vector<8x256xf32>
    %57 = arith.maximumf %55, %56 : vector<8x256xf32>
    %c0_9 = arith.constant 0 : index
    %c0_10 = arith.constant 0 : index
    %c0_11 = arith.constant 0 : index
    %58 = vector.load %arg4[%c0_9, %c0_10, %c0_11] : memref<2x256x256xbf16, #tpu.memory_space<vmem>>, vector<1x256x256xbf16>
    %59 = vector.shape_cast %58 : vector<1x256x256xbf16> to vector<256x256xbf16>
    %60 = arith.extf %59 : vector<256x256xbf16> to vector<256x256xf32>
    %cst_12 = arith.constant dense<0.000000e+00> : vector<8x256xf32>
    %61 = tpu.matmul %57, %60, %cst_12 {dimension_numbers = #tpu.dot_dimension_numbers<[1], [0], [0], [1], [0, 0, 1, 1], [], []>} : vector<8x256xf32>, vector<256x256xf32>, vector<8x256xf32> -> vector<8x256xf32>
    %c0_13 = arith.constant 0 : index
    %c0_14 = arith.constant 0 : index
    %c0_15 = arith.constant 0 : index
    %62 = vector.load %arg5[%c0_13, %c0_14, %c0_15] : memref<2x1x256xf32, #tpu.memory_space<vmem>>, vector<1x1x256xf32>
    %63 = vector.shape_cast %62 : vector<1x1x256xf32> to vector<1x256xf32>
    %64 = vector.broadcast %63 : vector<1x256xf32> to vector<8x256xf32>
    %65 = arith.addf %61, %64 : vector<8x256xf32>
    %cst_16 = arith.constant 0.000000e+00 : f32
    %66 = vector.broadcast %cst_16 : f32 to vector<8x256xf32>
    %67 = arith.maximumf %65, %66 : vector<8x256xf32>
    %c0_17 = arith.constant 0 : index
    %c0_18 = arith.constant 0 : index
    %c0_19 = arith.constant 0 : index
    %68 = vector.load %arg6[%c0_17, %c0_18, %c0_19] : memref<2x1x256xbf16, #tpu.memory_space<vmem>>, vector<1x1x256xbf16>
    %69 = vector.shape_cast %68 : vector<1x1x256xbf16> to vector<1x256xbf16>
    %70 = arith.extf %69 : vector<1x256xbf16> to vector<1x256xf32>
    %71 = vector.broadcast %70 : vector<1x256xf32> to vector<8x256xf32>
    %72 = arith.mulf %67, %71 : vector<8x256xf32>
    %cst_20 = arith.constant dense<0.000000e+00> : vector<8xf32>
    %73 = vector.multi_reduction <add>, %72, %cst_20 [1] : vector<8x256xf32> to vector<8xf32>
    %c0_21 = arith.constant 0 : index
    %74 = memref.load %arg7[%c0_21] : memref<2xf32, #tpu.memory_space<smem>>
    %75 = vector.broadcast %74 : f32 to vector<8xf32>
    %76 = arith.addf %73, %75 : vector<8xf32>
    %c0_22 = arith.constant 0 : index
    %c0_23 = arith.constant 0 : index
    %77 = vector.load %arg8[%c0_22, %c0_23] : memref<2x8xf32, #tpu.memory_space<vmem>>, vector<1x8xf32>
    %78 = vector.shape_cast %77 : vector<1x8xf32> to vector<8xf32>
    %79 = vector.shape_cast %76 : vector<8xf32> to vector<1x8xf32>
    tpu.vector_store %arg8[%c0_22, %c0_23], %79 {strides = array<i32>} : memref<2x8xf32, #tpu.memory_space<vmem>>, vector<1x8xf32>,
    %c1 = arith.constant 1 : index
    %c0_24 = arith.constant 0 : index
    %c0_25 = arith.constant 0 : index
    %80 = vector.load %arg2[%c1, %c0_24, %c0_25] : memref<2x8x256xbf16, #tpu.memory_space<vmem>>, vector<1x8x256xbf16>
    %81 = vector.shape_cast %80 : vector<1x8x256xbf16> to vector<8x256xbf16>
    %82 = arith.extf %81 : vector<8x256xbf16> to vector<8x256xf32>
    %83 = vector.extract_strided_slice %0 {offsets = [0, 0], sizes = [8, 1], strides = [1, 1]} : vector<8x6xf32> to vector<8x1xf32>
    %84 = vector.extract_strided_slice %82 {offsets = [0, 0], sizes = [1, 256], strides = [1, 1]} : vector<8x256xf32> to vector<1x256xf32>
    %85 = vector.broadcast %83 : vector<8x1xf32> to vector<8x256xf32>
    %86 = vector.broadcast %84 : vector<1x256xf32> to vector<8x256xf32>
    %87 = arith.mulf %85, %86 : vector<8x256xf32>
    %88 = vector.extract_strided_slice %0 {offsets = [0, 1], sizes = [8, 1], strides = [1, 1]} : vector<8x6xf32> to vector<8x1xf32>
    %89 = vector.extract_strided_slice %82 {offsets = [1, 0], sizes = [1, 256], strides = [1, 1]} : vector<8x256xf32> to vector<1x256xf32>
    %90 = vector.broadcast %88 : vector<8x1xf32> to vector<8x256xf32>
    %91 = vector.broadcast %89 : vector<1x256xf32> to vector<8x256xf32>
    %92 = arith.mulf %90, %91 : vector<8x256xf32>
    %93 = arith.addf %87, %92 : vector<8x256xf32>
    %94 = vector.extract_strided_slice %0 {offsets = [0, 2], sizes = [8, 1], strides = [1, 1]} : vector<8x6xf32> to vector<8x1xf32>
    %95 = vector.extract_strided_slice %82 {offsets = [2, 0], sizes = [1, 256], strides = [1, 1]} : vector<8x256xf32> to vector<1x256xf32>
    %96 = vector.broadcast %94 : vector<8x1xf32> to vector<8x256xf32>
    %97 = vector.broadcast %95 : vector<1x256xf32> to vector<8x256xf32>
    %98 = arith.mulf %96, %97 : vector<8x256xf32>
    %99 = arith.addf %93, %98 : vector<8x256xf32>
    %100 = vector.extract_strided_slice %0 {offsets = [0, 3], sizes = [8, 1], strides = [1, 1]} : vector<8x6xf32> to vector<8x1xf32>
    %101 = vector.extract_strided_slice %82 {offsets = [3, 0], sizes = [1, 256], strides = [1, 1]} : vector<8x256xf32> to vector<1x256xf32>
    %102 = vector.broadcast %100 : vector<8x1xf32> to vector<8x256xf32>
    %103 = vector.broadcast %101 : vector<1x256xf32> to vector<8x256xf32>
    %104 = arith.mulf %102, %103 : vector<8x256xf32>
    %105 = arith.addf %99, %104 : vector<8x256xf32>
    %106 = vector.extract_strided_slice %0 {offsets = [0, 4], sizes = [8, 1], strides = [1, 1]} : vector<8x6xf32> to vector<8x1xf32>
    %107 = vector.extract_strided_slice %82 {offsets = [4, 0], sizes = [1, 256], strides = [1, 1]} : vector<8x256xf32> to vector<1x256xf32>
    %108 = vector.broadcast %106 : vector<8x1xf32> to vector<8x256xf32>
    %109 = vector.broadcast %107 : vector<1x256xf32> to vector<8x256xf32>
    %110 = arith.mulf %108, %109 : vector<8x256xf32>
    %111 = arith.addf %105, %110 : vector<8x256xf32>
    %112 = vector.extract_strided_slice %0 {offsets = [0, 5], sizes = [8, 1], strides = [1, 1]} : vector<8x6xf32> to vector<8x1xf32>
    %113 = vector.extract_strided_slice %82 {offsets = [5, 0], sizes = [1, 256], strides = [1, 1]} : vector<8x256xf32> to vector<1x256xf32>
    %114 = vector.broadcast %112 : vector<8x1xf32> to vector<8x256xf32>
    %115 = vector.broadcast %113 : vector<1x256xf32> to vector<8x256xf32>
    %116 = arith.mulf %114, %115 : vector<8x256xf32>
    %117 = arith.addf %111, %116 : vector<8x256xf32>
    %118 = vector.extract_strided_slice %1 {offsets = [0, 0], sizes = [8, 1], strides = [1, 1]} : vector<8x2xf32> to vector<8x1xf32>
    %119 = vector.extract_strided_slice %82 {offsets = [6, 0], sizes = [1, 256], strides = [1, 1]} : vector<8x256xf32> to vector<1x256xf32>
    %120 = vector.broadcast %118 : vector<8x1xf32> to vector<8x256xf32>
    %121 = vector.broadcast %119 : vector<1x256xf32> to vector<8x256xf32>
    %122 = arith.mulf %120, %121 : vector<8x256xf32>
    %123 = arith.addf %117, %122 : vector<8x256xf32>
    %124 = vector.extract_strided_slice %1 {offsets = [0, 1], sizes = [8, 1], strides = [1, 1]} : vector<8x2xf32> to vector<8x1xf32>
    %125 = vector.extract_strided_slice %82 {offsets = [7, 0], sizes = [1, 256], strides = [1, 1]} : vector<8x256xf32> to vector<1x256xf32>
    %126 = vector.broadcast %124 : vector<8x1xf32> to vector<8x256xf32>
    %127 = vector.broadcast %125 : vector<1x256xf32> to vector<8x256xf32>
    %128 = arith.mulf %126, %127 : vector<8x256xf32>
    %129 = arith.addf %123, %128 : vector<8x256xf32>
    %c1_26 = arith.constant 1 : index
    %c0_27 = arith.constant 0 : index
    %c0_28 = arith.constant 0 : index
    %130 = vector.load %arg3[%c1_26, %c0_27, %c0_28] : memref<2x1x256xf32, #tpu.memory_space<vmem>>, vector<1x1x256xf32>
    %131 = vector.shape_cast %130 : vector<1x1x256xf32> to vector<1x256xf32>
    %132 = vector.broadcast %131 : vector<1x256xf32> to vector<8x256xf32>
    %133 = arith.addf %129, %132 : vector<8x256xf32>
    %cst_29 = arith.constant 0.000000e+00 : f32
    %134 = vector.broadcast %cst_29 : f32 to vector<8x256xf32>
    %135 = arith.maximumf %133, %134 : vector<8x256xf32>
    %c1_30 = arith.constant 1 : index
    %c0_31 = arith.constant 0 : index
    %c0_32 = arith.constant 0 : index
    %136 = vector.load %arg4[%c1_30, %c0_31, %c0_32] : memref<2x256x256xbf16, #tpu.memory_space<vmem>>, vector<1x256x256xbf16>
    %137 = vector.shape_cast %136 : vector<1x256x256xbf16> to vector<256x256xbf16>
    %138 = arith.extf %137 : vector<256x256xbf16> to vector<256x256xf32>
    %cst_33 = arith.constant dense<0.000000e+00> : vector<8x256xf32>
    %139 = tpu.matmul %135, %138, %cst_33 {dimension_numbers = #tpu.dot_dimension_numbers<[1], [0], [0], [1], [0, 0, 1, 1], [], []>} : vector<8x256xf32>, vector<256x256xf32>, vector<8x256xf32> -> vector<8x256xf32>
    %c1_34 = arith.constant 1 : index
    %c0_35 = arith.constant 0 : index
    %c0_36 = arith.constant 0 : index
    %140 = vector.load %arg5[%c1_34, %c0_35, %c0_36] : memref<2x1x256xf32, #tpu.memory_space<vmem>>, vector<1x1x256xf32>
    %141 = vector.shape_cast %140 : vector<1x1x256xf32> to vector<1x256xf32>
    %142 = vector.broadcast %141 : vector<1x256xf32> to vector<8x256xf32>
    %143 = arith.addf %139, %142 : vector<8x256xf32>
    %cst_37 = arith.constant 0.000000e+00 : f32
    %144 = vector.broadcast %cst_37 : f32 to vector<8x256xf32>
    %145 = arith.maximumf %143, %144 : vector<8x256xf32>
    %c1_38 = arith.constant 1 : index
    %c0_39 = arith.constant 0 : index
    %c0_40 = arith.constant 0 : index
    %146 = vector.load %arg6[%c1_38, %c0_39, %c0_40] : memref<2x1x256xbf16, #tpu.memory_space<vmem>>, vector<1x1x256xbf16>
    %147 = vector.shape_cast %146 : vector<1x1x256xbf16> to vector<1x256xbf16>
    %148 = arith.extf %147 : vector<1x256xbf16> to vector<1x256xf32>
    %149 = vector.broadcast %148 : vector<1x256xf32> to vector<8x256xf32>
    %150 = arith.mulf %145, %149 : vector<8x256xf32>
    %cst_41 = arith.constant dense<0.000000e+00> : vector<8xf32>
    %151 = vector.multi_reduction <add>, %150, %cst_41 [1] : vector<8x256xf32> to vector<8xf32>
    %c1_42 = arith.constant 1 : index
    %152 = memref.load %arg7[%c1_42] : memref<2xf32, #tpu.memory_space<smem>>
    %153 = vector.broadcast %152 : f32 to vector<8xf32>
    %154 = arith.addf %151, %153 : vector<8xf32>
    %c1_43 = arith.constant 1 : index
    %c0_44 = arith.constant 0 : index
    %155 = vector.load %arg8[%c1_43, %c0_44] : memref<2x8xf32, #tpu.memory_space<vmem>>, vector<1x8xf32>
    %156 = vector.shape_cast %155 : vector<1x8xf32> to vector<8xf32>
    %157 = vector.shape_cast %154 : vector<8xf32> to vector<1x8xf32>
    tpu.vector_store %arg8[%c1_43, %c0_44], %157 {strides = array<i32>} : memref<2x8xf32, #tpu.memory_space<vmem>>, vector<1x8xf32>,
    return
  }
}

</mosaic_0001>

<bundles_post_ra>
// kernel: critic_forward.1
= control target key start
LH: loop header
LB: loop body
LE: loop exit
PB: predicated region body
PF: predicated region fallthrough
CT: control target
= control target key end

     0   :  { %13 = vsyncpa [#allocation3], 0  ;;  %s1400_s0 = inlined_call_operand.hbm [shape: f32[8,6], index: 0, kind: input, shape index: {}]   ;;  %s1401_s1 = inlined_call_operand.vmem [shape: f32[8,2], index: 1, kind: input, shape index: {}]   ;;  %s1402_s2 = inlined_call_operand.vmem [shape: bf16[2,8,256], index: 2, kind: input, shape index: {}]   ;;  %s1403_s3 = inlined_call_operand.vmem [shape: f32[2,1,256], index: 3, kind: input, shape index: {}]   ;;  %s1404_s4 = inlined_call_operand.hbm [shape: bf16[2,256,256], index: 4, kind: input, shape index: {}]   ;;  %s1405_s5 = inlined_call_operand.vmem [shape: f32[2,1,256], index: 5, kind: input, shape index: {}]   ;;  %s1406_s6 = inlined_call_operand.vmem [shape: bf16[2,1,256], index: 6, kind: input, shape index: {}]   ;;  %s1407_s7 = inlined_call_operand.vmem [shape: f32[2], index: 7, kind: input, shape index: {}]   ;;  %s1408_s8 = inlined_call_operand.vmem [shape: f32[2,8], index: 8, kind: output, shape index: {}]  }
   0x1   :  { %14 = vsyncpa [#allocation6], 0 }
   0x2   :  { %15 = vsyncpa [#allocation4], 0  ;;  %s1154_s27 = smov [#allocation2]   ;;  %s1155_s29 = smov [#allocation5]  }
   0x3   :  { %s22_s28 = sshll.u32 %s1154_s27, 4  ;;  %s37_s30 = sshll.u32 %s1155_s29, 4  ;;  %s23_s28 = int_to_ptr.vmem [resolvable:$true] %s22_s28  ;;  %s1210_s30 = int_to_ptr.vmem [resolvable:$true] %s37_s30 }
   0x4   :  { %s1092_s11 = scalar_lea.hbm %s1400_s0, 128 }
   0x5   :  { %p1093_p0 = scmp.ne.s32.totalorder %s1400_s0, %s1092_s11  ;;  %p1096_p1 = scmp.lt.u32.totalorder %s1092_s11, %s1400_s0 }
   0x7   :  { %p1098_p2 = pnand %p1096_p1, %p1093_p0 }
   0x9   :  { %1101 = shalt.err (!%p1098_p2)
}
   0xa   :  { %s1102_s16 = scalar_lea.vmem %s23_s28, 128  ;;  %p1107_p4 = scmp.lt.s32.totalorder %s23_s28, %s23_s28 }
   0xb   :  { %p1103_p3 = scmp.ne.s32.totalorder %s23_s28, %s1102_s16  ;;  %p1108_p5 = scmp.lt.s32.totalorder %s1102_s16, %s1102_s16 }
   0xd   :  { %p1109_p6 = por %p1108_p5, %p1107_p4 }
   0xf   :  { %p1110_p7 = pnand %p1109_p6, %p1103_p3 }
  0x11   :  { %1113 = shalt.err (!%p1110_p7)
}
  0x12   :  { %25 = dma.hbm_to_vmem [thread:$0]  %s1400_s0, 128, %s23_s28, [#allocation3]  }
  0x13   :  { %s1114_s21 = scalar_lea.hbm %s1404_s4, 8192 }
  0x14   :  { %p1115_p8 = scmp.ne.s32.totalorder %s1404_s4, %s1114_s21  ;;  %p1118_p9 = scmp.lt.u32.totalorder %s1114_s21, %s1404_s4 }
  0x16   :  { %p1120_p10 = pnand %p1118_p9, %p1115_p8 }
  0x18   :  { %1123 = shalt.err (!%p1120_p10)
}
  0x19   :  { %s1124_s26 = scalar_lea.vmem %s1210_s30, 8192  ;;  %p1129_p12 = scmp.lt.s32.totalorder %s1210_s30, %s1210_s30 }
  0x1a   :  { %p1125_p11 = scmp.ne.s32.totalorder %s1210_s30, %s1124_s26  ;;  %p1130_p13 = scmp.lt.s32.totalorder %s1124_s26, %s1124_s26 }
  0x1c   :  { %p1131_p0 = por %p1130_p13, %p1129_p12 }
  0x1e   :  { %p1132_p1 = pnand %p1131_p0, %p1125_p11 }
  0x20   :  { %1135 = shalt.err (!%p1132_p1)
}
  0x21   :  { %s1156_s0 = smov 128   ;;  %s1157_s27 = smov 8  }
  0x22   :  { %43 = dma.hbm_to_vmem [thread:$0]  %s1404_s4, 8192, %s1210_s30, [#allocation6], %s1156_s0, %s1156_s0, %s1157_s27  }
  0x23   :  { %s54_s11 = sshll.u32 %s1407_s7, 4  ;;  %s55_s11 = int_to_ptr.vmem [resolvable:$true] %s54_s11 }
  0x24   :  { %s1136_s12 = scalar_lea.vmem %s55_s11, 16  ;;  %p1141_p3 = scmp.lt.s32.totalorder %s55_s11, %s55_s11 }
  0x25   :  { %p1137_p2 = scmp.ne.s32.totalorder %s55_s11, %s1136_s12  ;;  %p1142_p4 = scmp.lt.s32.totalorder %s1136_s12, %s1136_s12 }
  0x27   :  { %p1143_p5 = por %p1142_p4, %p1141_p3 }
  0x29   :  { %p1144_p6 = pnand %p1143_p5, %p1137_p2 }
  0x2b   :  { %1147 = shalt.err (!%p1144_p6)
}
  0x2c   :  { %s1158_s13 = smov [#allocation7]  }
  0x2d   :  { %57 = dma.vmem_to_smem %s55_s11, 16, %s1158_s13, [#allocation4]  }
  0x2e   :  { %1148 = dma.done.wait [#allocation3], 128  }
  0x2f   :  { %1149 = vsyncadd [#allocation3], 4294967168 }
  0x30   :  { %1150 = dma.done.wait [#allocation6], 8192  }
  0x31   :  { %1151 = vsyncadd [#allocation6], 4294959104 }
  0x32   :  { %1152 = dma.done.wait [#allocation4], 16  }
  0x33   :  { %1153 = vsyncadd [#allocation4], 4294967280 }
  0x34   :  { %67 = sfence }
  0x35   :  { %v68_v0 = vld [vmem:[#allocation2] sm:$0xff]  ;;  %v1159_v1 = vmov 2   ;;  %v1160_v2 = vmov 0   ;;  %v996_v3 = vld [vmem:[#allocation5 + $0x4] ss:$8 sps:$4 sm:$0xff]   ;;  %v1161_v10 = vmov 3  }
  0x36   :  { %989 = vset.pattern.permute.xlu1 %v1159_v1  ;;  %987 = vset.pattern.permute.xlu0 %v1160_v2  ;;  %v998_v4 = vld [vmem:[#allocation5 + $0x104] ss:$8 sps:$4 sm:$0xff]   ;;  %v1000_v5 = vld [vmem:[#allocation5] ss:$8 sps:$4 sm:$0xff]   ;;  %v1002_v7 = vld [vmem:[#allocation5 + $0x14] ss:$8 sps:$4 sm:$0xff]  }
  0x37   :  { %105 = vperm.xlu1 %989, %v68_v0   ;;  %75 = vperm.xlu0 %987, %v68_v0   ;;  %v1001_v6 = vld [vmem:[#allocation5 + $0x100] ss:$8 sps:$4 sm:$0xff]   ;;  %v1004_v8 = vld [vmem:[#allocation5 + $0x114] ss:$8 sps:$4 sm:$0xff]   ;;  %v1006_v9 = vld [vmem:[#allocation5 + $0x10] ss:$8 sps:$4 sm:$0xff]  }
  0x38   :  { %785 = vmatprep.subr.bf16.mxu0 %v996_v3  ;;  %849 = vmatprep.subr.bf16.mxu1 %v998_v4  ;;  %v1162_v11 = vmov 1   ;;  %v1007_v12 = vld [vmem:[#allocation5 + $0x110] ss:$8 sps:$4 sm:$0xff]   ;;  %v1008_v13 = vld [vmem:[#allocation5 + $0x24] ss:$8 sps:$4 sm:$0xff]   ;;  %v1163_v19 = vmov 4  }
  0x39   :  { %787 = vmatpush1.bf16.msra.mxu0 %v1000_v5  ;;  %851 = vmatpush1.bf16.msra.mxu1 %v1001_v6  ;;  %v1010_v14 = vld [vmem:[#allocation5 + $0x124] ss:$8 sps:$4 sm:$0xff]   ;;  %v1012_v15 = vld [vmem:[#allocation5 + $0x20] ss:$8 sps:$4 sm:$0xff]   ;;  %v1014_v17 = vld [vmem:[#allocation5 + $0x34] ss:$8 sps:$4 sm:$0xff]  }
  0x3a   :  { %789 = vmatprep.subr.bf16.mxu0 %v1002_v7  ;;  %853 = vmatprep.subr.bf16.mxu1 %v1004_v8  ;;  %v1013_v16 = vld [vmem:[#allocation5 + $0x120] ss:$8 sps:$4 sm:$0xff]   ;;  %v1016_v18 = vld [vmem:[#allocation5 + $0x134] ss:$8 sps:$4 sm:$0xff]   ;;  %v1164_v20 = vmov 5   ;;  %v1409_v8 = vlaneseq  ;;  %vm435_vm0 = vcmask 57344  }
  0x3b   :  { %990 = vset.pattern.permute.xlu1 %v1161_v10  ;;  %988 = vset.pattern.permute.xlu0 %v1162_v11  ;;  %v69_v21 = vld [vmem:[%s1401_s1] sm:$0xff]  ;;  %v1020_v24 = vld [vmem:[#allocation5 + $0x44] ss:$8 sps:$4 sm:$0xff]   ;;  %v1024_v26 = vld [vmem:[#allocation5 + $0x40] ss:$8 sps:$4 sm:$0xff]  }
  0x3c   :  { %121 = vperm.xlu1 %990, %v68_v0   ;;  %89 = vperm.xlu0 %988, %v68_v0   ;;  %v1018_v22 = vld [vmem:[#allocation5 + $0x30] ss:$8 sps:$4 sm:$0xff]   ;;  %v1022_v25 = vld [vmem:[#allocation5 + $0x144] ss:$8 sps:$4 sm:$0xff]   ;;  %v1025_v27 = vld [vmem:[#allocation5 + $0x140] ss:$8 sps:$4 sm:$0xff]  }
  0x3d   :  { %791 = vmatpush1.bf16.msra.mxu0 %v1006_v9  ;;  %855 = vmatpush1.bf16.msra.mxu1 %v1007_v12  ;;  %v1019_v23 = vld [vmem:[#allocation5 + $0x130] ss:$8 sps:$4 sm:$0xff]   ;;  %v1026_v28 = vld [vmem:[#allocation5 + $0x54] ss:$8 sps:$4 sm:$0xff]   ;;  %v1032_v32 = vld [vmem:[#allocation5 + $0x64] ss:$8 sps:$4 sm:$0xff]  }
  0x3e   :  { %793 = vmatprep.subr.bf16.mxu0 %v1008_v13  ;;  %857 = vmatprep.subr.bf16.mxu1 %v1010_v14  ;;  %v1028_v29 = vld [vmem:[#allocation5 + $0x154] ss:$8 sps:$4 sm:$0xff]   ;;  %v1030_v30 = vld [vmem:[#allocation5 + $0x50] ss:$8 sps:$4 sm:$0xff]   ;;  %v1034_v33 = vld [vmem:[#allocation5 + $0x164] ss:$8 sps:$4 sm:$0xff]  }
  0x3f   :  { %v1031_v31 = vld [vmem:[#allocation5 + $0x150] ss:$8 sps:$4 sm:$0xff]   ;;  %v1036_v34 = vld [vmem:[#allocation5 + $0x60] ss:$8 sps:$4 sm:$0xff]   ;;  %v1038_v36 = vld [vmem:[#allocation5 + $0x74] ss:$8 sps:$4 sm:$0xff]  }
  0x40   :  { %991 = vset.pattern.permute.xlu1 %v1163_v19  ;;  %992 = vset.pattern.permute.xlu0 %v1164_v20  ;;  %v1037_v35 = vld [vmem:[#allocation5 + $0x160] ss:$8 sps:$4 sm:$0xff]   ;;  %v1040_v37 = vld [vmem:[#allocation5 + $0x174] ss:$8 sps:$4 sm:$0xff]   ;;  %v1042_v38 = vld [vmem:[#allocation5 + $0x70] ss:$8 sps:$4 sm:$0xff]  }
  0x41   :  { %137 = vperm.xlu1 %991, %v68_v0   ;;  %153 = vperm.xlu0 %992, %v68_v0   ;;  %v1043_v39 = vld [vmem:[#allocation5 + $0x170] ss:$8 sps:$4 sm:$0xff]   ;;  %v1044_v40 = vld [vmem:[#allocation5 + $0x84] ss:$8 sps:$4 sm:$0xff]   ;;  %v1048_v42 = vld [vmem:[#allocation5 + $0x80] ss:$8 sps:$4 sm:$0xff]  }
  0x42   :  { %795 = vmatpush1.bf16.msra.mxu0 %v1012_v15  ;;  %859 = vmatpush1.bf16.msra.mxu1 %v1013_v16  ;;  %v1046_v41 = vld [vmem:[#allocation5 + $0x184] ss:$8 sps:$4 sm:$0xff]   ;;  %v1049_v43 = vld [vmem:[#allocation5 + $0x180] ss:$8 sps:$4 sm:$0xff]   ;;  %v1050_v44 = vld [vmem:[#allocation5 + $0x94] ss:$8 sps:$4 sm:$0xff]  }
  0x43   :  { %797 = vmatprep.subr.bf16.mxu0 %v1014_v17  ;;  %861 = vmatprep.subr.bf16.mxu1 %v1016_v18  ;;  %v1052_v45 = vld [vmem:[#allocation5 + $0x194] ss:$8 sps:$4 sm:$0xff]   ;;  %v1054_v46 = vld [vmem:[#allocation5 + $0x90] ss:$8 sps:$4 sm:$0xff]   ;;  %v1056_v48 = vld [vmem:[#allocation5 + $0xa4] ss:$8 sps:$4 sm:$0xff]  }
  0x44   :  { %v1055_v47 = vld [vmem:[#allocation5 + $0x190] ss:$8 sps:$4 sm:$0xff]   ;;  %v1058_v49 = vld [vmem:[#allocation5 + $0x1a4] ss:$8 sps:$4 sm:$0xff]   ;;  %v1060_v50 = vld [vmem:[#allocation5 + $0xa0] ss:$8 sps:$4 sm:$0xff]  }
  0x45   :  { %993 = vset.pattern.permute.xlu1 %v1160_v2  ;;  %995 = vset.pattern.permute.xlu0 %v1162_v11  ;;  %v1061_v51 = vld [vmem:[#allocation5 + $0x1a0] ss:$8 sps:$4 sm:$0xff]   ;;  %v1062_v52 = vld [vmem:[#allocation5 + $0xb4] ss:$8 sps:$4 sm:$0xff]   ;;  %v1066_v54 = vld [vmem:[#allocation5 + $0xb0] ss:$8 sps:$4 sm:$0xff]  }
  0x46   :  { %170 = vperm.xlu1 %993, %v69_v21   ;;  %799 = vmatpush1.bf16.msra.mxu0 %v1018_v22  ;;  %v1064_v53 = vld [vmem:[#allocation5 + $0x1b4] ss:$8 sps:$4 sm:$0xff]   ;;  %v1067_v55 = vld [vmem:[#allocation5 + $0x1b0] ss:$8 sps:$4 sm:$0xff]   ;;  %v1068_v56 = vld [vmem:[#allocation5 + $0xc4] ss:$8 sps:$4 sm:$0xff]  }
  0x47   :  { %863 = vmatpush1.bf16.msra.mxu1 %v1019_v23  ;;  %801 = vmatprep.subr.bf16.mxu0 %v1020_v24  ;;  %v1070_v57 = vld [vmem:[#allocation5 + $0x1c4] ss:$8 sps:$4 sm:$0xff]   ;;  %v1072_v58 = vld [vmem:[#allocation5 + $0xc0] ss:$8 sps:$4 sm:$0xff]   ;;  %v1074_v60 = vld [vmem:[#allocation5 + $0xd4] ss:$8 sps:$4 sm:$0xff]  }
  0x48   :  { %865 = vmatprep.subr.bf16.mxu1 %v1022_v25  ;;  %v1073_v59 = vld [vmem:[#allocation5 + $0x1c0] ss:$8 sps:$4 sm:$0xff]   ;;  %v1076_v61 = vld [vmem:[#allocation5 + $0x1d4] ss:$8 sps:$4 sm:$0xff]   ;;  %v1078_v62 = vld [vmem:[#allocation5 + $0xd0] ss:$8 sps:$4 sm:$0xff]  }
  0x49   :  { %v1079_v63 = vld [vmem:[#allocation5 + $0x1d0] ss:$8 sps:$4 sm:$0xff]   ;;  %v1080_v0 = vld [vmem:[#allocation5 + $0xe4] ss:$8 sps:$4 sm:$0xff]   ;;  %v1084_v2 = vld [vmem:[#allocation5 + $0xe0] ss:$8 sps:$4 sm:$0xff]  }
  0x4a   :  { %994 = vset.pattern.permute.xlu1 %v1162_v11  ;;  %803 = vmatpush1.bf16.msra.mxu0 %v1024_v26  ;;  %v1082_v1 = vld [vmem:[#allocation5 + $0x1e4] ss:$8 sps:$4 sm:$0xff]   ;;  %v1085_v3 = vld [vmem:[#allocation5 + $0x1e0] ss:$8 sps:$4 sm:$0xff]   ;;  %v1086_v4 = vld [vmem:[#allocation5 + $0xf4] ss:$8 sps:$4 sm:$0xff]  }
  0x4b   :  { %186 = vperm.xlu1 %994, %v69_v21   ;;  %867 = vmatpush1.bf16.msra.mxu1 %v1025_v27  ;;  %v1088_v5 = vld [vmem:[#allocation5 + $0x1f4] ss:$8 sps:$4 sm:$0xff]   ;;  %v1090_v6 = vld [vmem:[#allocation5 + $0xf0] ss:$8 sps:$4 sm:$0xff]   ;;  %v1248_v9 = vshrl.u32 %v1409_v8, 7  ;;  %v779_v11 = vld [vmem:[%s1402_s2 + $0x8] sm:$0xff] }
  0x4c   :  { %805 = vmatprep.subr.bf16.mxu0 %v1026_v28  ;;  %869 = vmatprep.subr.bf16.mxu1 %v1028_v29  ;;  %v1091_v7 = vld [vmem:[#allocation5 + $0x1f0] ss:$8 sps:$4 sm:$0xff]   ;;  %v1263_v15 = vunpack.c.l.bf16 %v779_v11  ;;  %v1265_v16 = vunpack.c.h.bf16 %v779_v11 }
  0x4d   :  { %v70_v10 = vld [vmem:[%s1402_s2] sm:$0xff]  ;;  %v1257_v12 = vsub.s32 2, %v1248_v9  ;;  %v1268_v17 = vsub.s32 0, %v1248_v9  ;;  %v126_v18 = vsub.s32 3, %v1248_v9  ;;  %v1272_v19 = vsub.s32 1, %v1248_v9 }
  0x4e   :  { %807 = vmatpush1.bf16.msra.mxu0 %v1030_v30  ;;  %v1259_v13 = vunpack.c.l.bf16 %v70_v10  ;;  %v1261_v14 = vunpack.c.h.bf16 %v70_v10  ;;  %v1275_v20 = vsub.s32 4, %v1248_v9  ;;  %v1278_v21 = vsub.s32 5, %v1248_v9 }
  0x4f   :  { %871 = vmatpush1.bf16.msra.mxu1 %v1031_v31  ;;  %809 = vmatprep.subr.bf16.mxu0 %v1032_v32  ;;  %v1281_v22 = vsub.s32 6, %v1248_v9  ;;  %v1284_v23 = vsub.s32 7, %v1248_v9  ;;  %v466_v26 = vrot.slane %v1263_v15, %v1257_v12  ;;  %v470_v27 = vrot.slane %v1265_v16, %v1257_v12 }
  0x50   :  { %873 = vmatprep.subr.bf16.mxu1 %v1034_v33  ;;  %v111_v24 = vrot.slane %v1259_v13, %v1257_v12  ;;  %v115_v25 = vrot.slane %v1261_v14, %v1257_v12  ;;  %v81_v28 = vrot.slane %v1259_v13, %v1268_v17  ;;  %v85_v29 = vrot.slane %v1261_v14, %v1268_v17 }
  0x51   :  { %v444_v30 = vrot.slane %v1263_v15, %v1268_v17  ;;  %v448_v31 = vrot.slane %v1265_v16, %v1268_v17 }
  0x52   :  { %811 = vmatpush1.bf16.msra.mxu0 %v1036_v34  ;;  %v127_v34 = vrot.slane %v1259_v13, %v126_v18 }
  0x53   :  { %875 = vmatpush1.bf16.msra.mxu1 %v1037_v35  ;;  %813 = vmatprep.subr.bf16.mxu0 %v1038_v36  ;;  %v131_v35 = vrot.slane %v1261_v14, %v126_v18  ;;  %v478_v36 = vrot.slane %v1263_v15, %v126_v18 }
  0x54   :  { %877 = vmatprep.subr.bf16.mxu1 %v1040_v37  ;;  %v482_v37 = vrot.slane %v1265_v16, %v126_v18 }
  0x56   :  { %815 = vmatpush1.bf16.msra.mxu0 %v1042_v38  ;;  %v95_v38 = vrot.slane %v1259_v13, %v1272_v19 }
  0x57   :  { %879 = vmatpush1.bf16.msra.mxu1 %v1043_v39  ;;  %817 = vmatprep.subr.bf16.mxu0 %v1044_v40  ;;  %v99_v39 = vrot.slane %v1261_v14, %v1272_v19  ;;  %v454_v40 = vrot.slane %v1263_v15, %v1272_v19 }
  0x58   :  { %881 = vmatprep.subr.bf16.mxu1 %v1046_v41  ;;  %v458_v41 = vrot.slane %v1265_v16, %v1272_v19 }
  0x5a   :  { %819 = vmatpush1.bf16.msra.mxu0 %v1048_v42  ;;  %v143_v42 = vrot.slane %v1259_v13, %v1275_v20 }
  0x5b   :  { %883 = vmatpush1.bf16.msra.mxu1 %v1049_v43  ;;  %821 = vmatprep.subr.bf16.mxu0 %v1050_v44  ;;  %v147_v43 = vrot.slane %v1261_v14, %v1275_v20  ;;  %v490_v44 = vrot.slane %v1263_v15, %v1275_v20 }
  0x5c   :  { %885 = vmatprep.subr.bf16.mxu1 %v1052_v45  ;;  %v494_v45 = vrot.slane %v1265_v16, %v1275_v20 }
  0x5e   :  { %823 = vmatpush1.bf16.msra.mxu0 %v1054_v46  ;;  %v159_v46 = vrot.slane %v1259_v13, %v1278_v21 }
  0x5f   :  { %887 = vmatpush1.bf16.msra.mxu1 %v1055_v47  ;;  %825 = vmatprep.subr.bf16.mxu0 %v1056_v48  ;;  %v163_v47 = vrot.slane %v1261_v14, %v1278_v21  ;;  %v502_v48 = vrot.slane %v1263_v15, %v1278_v21 }
  0x60   :  { %889 = vmatprep.subr.bf16.mxu1 %v1058_v49  ;;  %v506_v49 = vrot.slane %v1265_v16, %v1278_v21 }
  0x62   :  { %827 = vmatpush1.bf16.msra.mxu0 %v1060_v50  ;;  %v176_v50 = vrot.slane %v1259_v13, %v1281_v22 }
  0x63   :  { %891 = vmatpush1.bf16.msra.mxu1 %v1061_v51  ;;  %829 = vmatprep.subr.bf16.mxu0 %v1062_v52  ;;  %v180_v51 = vrot.slane %v1261_v14, %v1281_v22  ;;  %v514_v52 = vrot.slane %v1263_v15, %v1281_v22 }
  0x64   :  { %893 = vmatprep.subr.bf16.mxu1 %v1064_v53  ;;  %v518_v53 = vrot.slane %v1265_v16, %v1281_v22 }
  0x66   :  { %831 = vmatpush1.bf16.msra.mxu0 %v1066_v54 }
  0x67   :  { %895 = vmatpush1.bf16.msra.mxu1 %v1067_v55  ;;  %833 = vmatprep.subr.bf16.mxu0 %v1068_v56  ;;  %v192_v56 = vrot.slane %v1259_v13, %v1284_v23 }
  0x68   :  { %897 = vmatprep.subr.bf16.mxu1 %v1070_v57  ;;  %v526_v57 = vrot.slane %v1263_v15, %v1284_v23 }
  0x6a   :  { %835 = vmatpush1.bf16.msra.mxu0 %v1072_v58  ;;  %v196_v58 = vrot.slane %v1261_v14, %v1284_v23  ;;  %v398_v14 = vld [vmem:[%s1406_s6] sm:$0x3] }
  0x6b   :  { %899 = vmatpush1.bf16.msra.mxu1 %v1073_v59  ;;  %837 = vmatprep.subr.bf16.mxu0 %v1074_v60 }
  0x6c   :  { %901 = vmatprep.subr.bf16.mxu1 %v1076_v61 }
  0x6e   :  { %839 = vmatpush1.bf16.msra.mxu0 %v1078_v62 }
  0x6f   :  { %903 = vmatpush1.bf16.msra.mxu1 %v1079_v63  ;;  %841 = vmatprep.subr.bf16.mxu0 %v1080_v0 }
  0x70   :  { %905 = vmatprep.subr.bf16.mxu1 %v1082_v1 }
  0x72   :  { %843 = vmatpush1.bf16.msra.mxu0 %v1084_v2 }
  0x73   :  { %907 = vmatpush1.bf16.msra.mxu1 %v1085_v3  ;;  %845 = vmatprep.subr.bf16.mxu0 %v1086_v4 }
  0x74   :  { %909 = vmatprep.subr.bf16.mxu1 %v1088_v5 }
  0x76   :  { %847 = vmatpush1.bf16.msra.mxu0 %v1090_v6 }
  0x77   :  { %911 = vmatpush1.bf16.msra.mxu1 %v1091_v7 }
  0xb6   :  { %v106_v32 = vpop.permute.xlu1 %105  ;;  %v76_v33 = vpop.permute.xlu0 %75 }
  0xb7   :  { %v86_v60 = vmul.f32 %v81_v28, %v76_v33  ;;  %v87_v61 = vmul.f32 %v85_v29, %v76_v33  ;;  %v449_v62 = vmul.f32 %v444_v30, %v76_v33  ;;  %v450_v63 = vmul.f32 %v448_v31, %v76_v33 }
  0xb8   :  { %v116_v4 = vmul.f32 %v111_v24, %v106_v32  ;;  %v117_v5 = vmul.f32 %v115_v25, %v106_v32  ;;  %v471_v6 = vmul.f32 %v466_v26, %v106_v32  ;;  %v472_v7 = vmul.f32 %v470_v27, %v106_v32 }
  0xbb   :  { %v122_v54 = vpop.permute.xlu1 %121  ;;  %v90_v55 = vpop.permute.xlu0 %89 }
  0xbc   :  { %v100_v0 = vmul.f32 %v95_v38, %v90_v55  ;;  %v101_v1 = vmul.f32 %v99_v39, %v90_v55  ;;  %v459_v2 = vmul.f32 %v454_v40, %v90_v55  ;;  %v460_v3 = vmul.f32 %v458_v41, %v90_v55 }
  0xbd   :  { %v132_v21 = vmul.f32 %v127_v34, %v122_v54  ;;  %v133_v22 = vmul.f32 %v131_v35, %v122_v54  ;;  %v483_v8 = vmul.f32 %v478_v36, %v122_v54  ;;  %v484_v59 = vmul.f32 %v482_v37, %v122_v54 }
  0xbe   :  { %v102_v10 = vadd.f32 %v100_v0, %v86_v60  ;;  %v103_v11 = vadd.f32 %v101_v1, %v87_v61  ;;  %v461_v18 = vadd.f32 %v459_v2, %v449_v62  ;;  %v462_v20 = vadd.f32 %v460_v3, %v450_v63 }
  0xc0   :  { %v138_v28 = vpop.permute.xlu1 %137  ;;  %v118_v29 = vadd.f32 %v116_v4, %v102_v10  ;;  %v119_v30 = vadd.f32 %v117_v5, %v103_v11  ;;  %v473_v31 = vadd.f32 %v471_v6, %v461_v18  ;;  %v474_v33 = vadd.f32 %v472_v7, %v462_v20  ;;  %v154_v38 = vpop.permute.xlu0 %153 }
  0xc1   :  { %v148_v39 = vmul.f32 %v143_v42, %v138_v28  ;;  %v149_v40 = vmul.f32 %v147_v43, %v138_v28  ;;  %v495_v24 = vmul.f32 %v490_v44, %v138_v28  ;;  %v496_v25 = vmul.f32 %v494_v45, %v138_v28  ;;  %v201_v43 = vld [vmem:[%s1403_s3] sm:$0x3] }
  0xc2   :  { %v134_v26 = vadd.f32 %v132_v21, %v118_v29  ;;  %v135_v27 = vadd.f32 %v133_v22, %v119_v30  ;;  %v485_v32 = vadd.f32 %v483_v8, %v473_v31  ;;  %v486_v41 = vadd.f32 %v484_v59, %v474_v33  ;;  %v780_v8 = vld [vmem:[%s1403_s3 + $0x2] sm:$0x3]  ;;  %v313_v31 = vld [vmem:[%s1405_s5] sm:$0x3] }
  0xc3   :  { %v164_v55 = vmul.f32 %v159_v46, %v154_v38  ;;  %v165_v60 = vmul.f32 %v163_v47, %v154_v38  ;;  %v507_v34 = vmul.f32 %v502_v48, %v154_v38  ;;  %v508_v35 = vmul.f32 %v506_v49, %v154_v38  ;;  %v781_v33 = vld [vmem:[%s1405_s5 + $0x2] sm:$0x3]  ;;  %s783_s5 = sld [smem:[#allocation7 + $0x1]] }
  0xc4   :  { %v150_v36 = vadd.f32 %v148_v39, %v134_v26  ;;  %v151_v37 = vadd.f32 %v149_v40, %v135_v27  ;;  %v497_v54 = vadd.f32 %v495_v24, %v485_v32  ;;  %v498_v61 = vadd.f32 %v496_v25, %v486_v41 }
  0xc5   :  { %v171_v62 = vpop.permute.xlu1 %170  ;;  %v206_v48 = vrot.slane %v201_v43, %v1268_v17  ;;  %v210_v49 = vrot.slane %v201_v43, %v1272_v19  ;;  %v1410_v7 = vrot.slane %v1265_v16, %v1284_v23  ;;  %v782_v16 = vld [vmem:[%s1406_s6 + $0x2] sm:$0x3]  ;;  %v399_v23 = vunpack.c.l.bf16 %v398_v14  ;;  %s424_s6 = sld [smem:[#allocation7]] }
  0xc6   :  { %v181_v63 = vmul.f32 %v176_v50, %v171_v62  ;;  %v182_v0 = vmul.f32 %v180_v51, %v171_v62  ;;  %v519_v1 = vmul.f32 %v514_v52, %v171_v62  ;;  %v520_v42 = vmul.f32 %v518_v53, %v171_v62 }
  0xc7   :  { %v166_v44 = vadd.f32 %v164_v55, %v150_v36  ;;  %v509_v45 = vadd.f32 %v507_v34, %v497_v54  ;;  %v167_v46 = vadd.f32 %v165_v60, %v151_v37  ;;  %v510_v47 = vadd.f32 %v508_v35, %v498_v61 }
  0xc8   :  { %v541_v50 = vrot.slane %v780_v8, %v1268_v17  ;;  %v545_v51 = vrot.slane %v780_v8, %v1272_v19  ;;  %v318_v38 = vrot.slane %v313_v31, %v1268_v17  ;;  %v404_v39 = vrot.slane %v399_v23, %v1268_v17 }
  0xc9   :  { %v183_v52 = vadd.f32 %v181_v63, %v166_v44  ;;  %v521_v53 = vadd.f32 %v519_v1, %v509_v45  ;;  %v184_v2 = vadd.f32 %v182_v0, %v167_v46  ;;  %v522_v3 = vadd.f32 %v520_v42, %v510_v47 }
  0xca   :  { %v187_v59 = vpop.permute.xlu1 %186  ;;  %v655_v40 = vrot.slane %v781_v33, %v1268_v17  ;;  %v322_v25 = vrot.slane %v313_v31, %v1272_v19  ;;  %v408_v26 = vrot.slane %v399_v23, %v1257_v12  ;;  %v659_v27 = vrot.slane %v781_v33, %v1272_v19 }
  0xcb   :  { %v197_v4 = vmul.f32 %v192_v56, %v187_v59  ;;  %v531_v5 = vmul.f32 %v526_v57, %v187_v59  ;;  %v198_v6 = vmul.f32 %v196_v58, %v187_v59  ;;  %v532_v10 = vmul.f32 %v1410_v7, %v187_v59 }
  0xcc   :  { %v737_v58 = vunpack.c.l.bf16 %v782_v16  ;;  %v414_v34 = vrot.slane %v404_v39, %v1268_v17  ;;  %v418_v62 = vrot.slane %v408_v26, %v1268_v17 }
  0xcd   :  { %v200_v11 = vadd.f32 %v198_v6, %v184_v2  ;;  %v534_v18 = vadd.f32 %v532_v10, %v522_v3  ;;  %v199_v20 = vadd.f32 %v197_v4, %v183_v52  ;;  %v533_v21 = vadd.f32 %v531_v5, %v521_v53 }
  0xce   :  { %v742_v24 = vrot.slane %v737_v58, %v1268_v17  ;;  %v746_v32 = vrot.slane %v737_v58, %v1257_v12 }
  0xcf   :  { %v214_v22 = vadd.f32 %v210_v49, %v200_v11  ;;  %v549_v28 = vadd.f32 %v545_v51, %v534_v18  ;;  %v213_v13 = vadd.f32 %v206_v48, %v199_v20  ;;  %v548_v56 = vadd.f32 %v541_v50, %v533_v21 }
  0xd0   :  { %v752_v36 = vrot.slane %v742_v24, %v1268_v17  ;;  %v756_v0 = vrot.slane %v746_v32, %v1268_v17  ;;  %v1411_v48 = vlaneseq  ;;  %v763_v50 = vstv %s783_s5 }
  0xd1   :  { %v216_v29 = vmax.f32 %v214_v22, 0.0  ;;  %v551_v30 = vmax.f32 %v549_v28, 0.0  ;;  %v215_v15 = vmax.f32 %v213_v13, 0.0  ;;  %v550_v57 = vmax.f32 %v548_v56, 0.0 }
  0xd2   :  { %v429_v49 = vand.u32 127, %v1411_v48  ;;  %v425_v51 = vstv %s424_s6 }
  0xd3   :  { %389 = vmatprep.mubr.f32.mxu0 %v216_v29  ;;  %726 = vmatprep.mubr.f32.mxu1 %v551_v30 }
  0xd4   :  { %390 = vmatmul.mubr.f32.vlgmr.msra.gmra.mrb[0].mxu0 %v215_v15  ;;  %727 = vmatmul.mubr.f32.vlgmr.msra.gmra.mrb[0].mxu1 %v550_v57  ;;  %v432_v17 = vsub.s32 %v429_v49, %v1248_v9 }
 0x1a7   :  { %v391_v41 = vpop.f32.mrb[0].mxu0  ;;  %v728_v55 = vpop.f32.mrb[0].mxu1 }
 0x1a8   :  { %v392_v60 = vadd.f32 %v391_v41, %v318_v38  ;;  %v729_v35 = vadd.f32 %v728_v55, %v655_v40  ;;  %v393_v37 = vpop.f32.mrb[1].mxu0  ;;  %v730_v54 = vpop.f32.mrb[1].mxu1 }
 0x1a9   :  { %v394_v61 = vadd.f32 %v393_v37, %v322_v25  ;;  %v731_v63 = vadd.f32 %v730_v54, %v659_v27 }
 0x1aa   :  { %v396_v1 = vmax.f32 %v392_v60, 0.0  ;;  %v733_v19 = vmax.f32 %v729_v35, 0.0 }
 0x1ab   :  { %v397_v42 = vmax.f32 %v394_v61, 0.0  ;;  %v734_v12 = vmax.f32 %v731_v63, 0.0 }
 0x1ac   :  { %v419_v43 = vmul.f32 %v414_v34, %v396_v1  ;;  %v757_v8 = vmul.f32 %v752_v36, %v733_v19 }
 0x1ad   :  { %v420_v44 = vmul.f32 %v418_v62, %v397_v42  ;;  %v758_v45 = vmul.f32 %v756_v0, %v734_v12 }
 0x1af   :  { %v759_v46 = vadd.f32 %v758_v45, %v757_v8  ;;  %v421_v47 = vadd.f32 %v420_v44, %v419_v43 }
 0x1b1   :  { %760 = vadd.xlane.f32.xlu1 %v759_v46  ;;  %422 = vadd.xlane.f32.xlu0 %v421_v47 }
 0x23e   :  { %v761_v52 = vpop.xlane.xlu1 %760  ;;  %v423_v53 = vpop.xlane.xlu0 %422 }
 0x23f   :  { %v764_v59 = vadd.f32 %v763_v50, %v761_v52  ;;  %v426_v2 = vadd.f32 %v425_v51, %v423_v53 }
 0x241   :  { %v769_v3 = vrot.slane %v764_v59, %v432_v17  ;;  %v433_v4 = vrot.slane %v426_v2, %v432_v17 }
 0x243   :  { %771 = vst.msk [vmem:[%s1408_s8 + $0x1] sm:$0x1] %vm435_vm0, %v769_v3  ;;  %436 = vst.msk [vmem:[%s1408_s8] sm:$0x1] %vm435_vm0, %v433_v4 }
 0x244   :  { %776 = vsyncpa [#allocation3], 1 }
 0x245   :  { %777 = vsyncpa [#allocation6], 1 }
 0x246   :  { %778 = vsyncpa [#allocation4], 1 }

</bundles_post_ra>
